<compile_context>
chip_gen: v5e
topology: v5e:2x2
jax: 0.10.0
libtpu: 0.0.40
codegen_flags: <defaults>
</compile_context>

<pallas_src>
import jax
import jax.numpy as jnp
from jax import lax
from jax.experimental import pallas as pl
from jax.experimental.pallas import tpu as pltpu


# ---------------------------------------------------------------------------
# Kernels
# ---------------------------------------------------------------------------
def _linear_f32out_kernel(x_ref, w_ref, b_ref, o_ref):
    """f32 output: accumulate directly into the (K-resident) output block."""
    k = pl.program_id(2)

    @pl.when(k == 0)
    def _():
        o_ref[...] = jnp.zeros_like(o_ref)

    # x tile: (tm, tk); w tile: (tn, tk) in PyTorch layout; contract dim 1/1
    # == x @ w.T on the MXU (rhs-transposed contraction, no vreg transpose).
    o_ref[...] += lax.dot_general(
        x_ref[...], w_ref[...],
        dimension_numbers=(((1,), (1,)), ((), ())),
        preferred_element_type=jnp.float32,
    )

    @pl.when(k == pl.num_programs(2) - 1)
    def _():
        o_ref[...] += b_ref[...]          # bias only once, in the epilogue


def _linear_acc_kernel(x_ref, w_ref, b_ref, o_ref, acc_ref):
    """Low-precision output: keep a separate f32 accumulator scratch."""
    k = pl.program_id(2)

    @pl.when(k == 0)
    def _():
        acc_ref[...] = jnp.zeros_like(acc_ref)

    acc_ref[...] += lax.dot_general(
        x_ref[...], w_ref[...],
        dimension_numbers=(((1,), (1,)), ((), ())),
        preferred_element_type=jnp.float32,
    )

    @pl.when(k == pl.num_programs(2) - 1)
    def _():
        o_ref[...] = (acc_ref[...] + b_ref[...]).astype(o_ref.dtype)


# ---------------------------------------------------------------------------
# Wrapper:  y = x @ weight.T + bias   (nn.Linear semantics)
# ---------------------------------------------------------------------------
def _round_up(x, m):
    return ((x + m - 1) // m) * m


def dason_net1_forward(x, weight, bias, *, tm=512, tn=512, tk=1024,
                       mxu_dtype=None):
    """x: (B, in_dim); weight: (out_dim, in_dim) [PyTorch layout]; bias: (out_dim,).

    mxu_dtype: optional compute dtype for the MXU operands (e.g. jnp.bfloat16)
    -- accumulation stays f32; output dtype matches the original x dtype.
    """
    B, in_dim = x.shape
    out_dim, in_dim_w = weight.shape
    assert in_dim == in_dim_w, "weight must be (out_dim, in_dim)"
    out_dtype = x.dtype

    if mxu_dtype is not None:
        x = x.astype(mxu_dtype)
        weight = weight.astype(mxu_dtype)
    in_dtype = x.dtype

    # ---- tile selection (respect (8, 128) layout constraints) -------------
    tm = max(8,   min(int(tm), _round_up(B, 8)))
    tm = (tm // 8) * 8
    tn = max(128, min(int(tn), _round_up(out_dim, 128)))
    tn = (tn // 128) * 128
    tk = max(128, min(int(tk), _round_up(in_dim, 128)))
    tk = (tk // 128) * 128

    # v7x has 2 TensorCores; make sure at least one "parallel" axis has >= 2
    # blocks when the problem is large enough to split (no effect on v5e/v6e).
    if pl.cdiv(B, tm) == 1 and pl.cdiv(out_dim, tn) == 1:
        if _round_up(out_dim, 128) >= 256 and tn >= 256:
            tn = max(128, (tn // 2 // 128) * 128)
        elif _round_up(B, 8) >= 16 and tm >= 16:
            tm = max(8, (tm // 2 // 8) * 8)

    B_pad = _round_up(B, tm)
    N_pad = _round_up(out_dim, tn)
    K_pad = _round_up(in_dim, tk)

    # Zero-pad to tile multiples (zeros along K contribute nothing; extra
    # rows/cols are sliced off after the call).
    if (B_pad, K_pad) != (B, in_dim):
        x = jnp.pad(x, ((0, B_pad - B), (0, K_pad - in_dim)))
    if (N_pad, K_pad) != (out_dim, in_dim):
        weight = jnp.pad(weight, ((0, N_pad - out_dim), (0, K_pad - in_dim)))
    bias2d = bias.astype(jnp.float32).reshape(1, out_dim)
    if N_pad != out_dim:
        bias2d = jnp.pad(bias2d, ((0, 0), (0, N_pad - out_dim)))

    grid = (B_pad // tm, N_pad // tn, K_pad // tk)

    in_is = jnp.dtype(in_dtype).itemsize
    out_is = jnp.dtype(out_dtype).itemsize
    f32out = jnp.dtype(out_dtype) == jnp.dtype(jnp.float32)

    # VMEM budget: double-buffered input/output tiles (+ f32 scratch if used),
    # with margin; capped well under v7x's 64 MiB physical VMEM.
    vmem_budget = 2 * (tm * tk * in_is + tn * tk * in_is + tn * 4
                       + tm * tn * out_is)
    if not f32out:
        vmem_budget += tm * tn * 4
    vmem_limit = min(max(int(vmem_budget * 1.25) + (2 << 20), 32 << 20),
                     48 << 20)

    cost = pl.CostEstimate(
        flops=2 * B_pad * N_pad * K_pad,
        transcendentals=0,
        bytes_accessed=(B_pad * K_pad * in_is + N_pad * K_pad * in_is
                        + N_pad * 4 + B_pad * N_pad * out_is),
    )

    kernel = _linear_f32out_kernel if f32out else _linear_acc_kernel
    scratch = [] if f32out else [pltpu.VMEM((tm, tn), jnp.float32)]

    y = pl.pallas_call(
        kernel,
        out_shape=jax.ShapeDtypeStruct((B_pad, N_pad), out_dtype),
        grid_spec=pltpu.PrefetchScalarGridSpec(
            num_scalar_prefetch=0,
            grid=grid,
            in_specs=[
                pl.BlockSpec((tm, tk), lambda i, j, k: (i, k)),   # x
                pl.BlockSpec((tn, tk), lambda i, j, k: (j, k)),   # weight (out,in)
                pl.BlockSpec((1, tn), lambda i, j, k: (0, j)),    # bias
            ],
            out_specs=pl.BlockSpec((tm, tn), lambda i, j, k: (i, j)),
            scratch_shapes=scratch,
        ),
        compiler_params=pltpu.CompilerParams(
            # M/N shard across TensorCores (v7x megacore); K is the reduction.
            dimension_semantics=("parallel", "parallel", "arbitrary"),
            vmem_limit_bytes=vmem_limit,
        ),
        cost_estimate=cost,
    )(x, weight, bias2d)

    if (B_pad, N_pad) != (B, out_dim):
        y = y[:B, :out_dim]
    return y


if __name__ == "__main__":
    # --- Small shapes consistent with DAsonNet1(in_dim, out_dim) -----------
    B, in_dim, out_dim = 8, 32, 16

    key = jax.random.PRNGKey(0)
    kx, kw, kb = jax.random.split(key, 3)

    x = jax.random.normal(kx, (B, in_dim), dtype=jnp.float32)
    # Mimic nn.Linear's uniform(-1/sqrt(in_dim), 1/sqrt(in_dim)) init.
    bound = 1.0 / jnp.sqrt(jnp.float32(in_dim))
    weight = jax.random.uniform(kw, (out_dim, in_dim), jnp.float32, -bound, bound)
    bias = jax.random.uniform(kb, (out_dim,), jnp.float32, -bound, bound)

    y = dason_net1_forward(x, weight, bias)          # exact f32 path
    jax.block_until_ready(y)

    y_ref = x @ weight.T + bias                      # torch nn.Linear semantics
    assert y.shape == (B, out_dim)
    assert jnp.allclose(y, y_ref, atol=1e-5, rtol=1e-5)

    # --- Larger, non-tile-divisible shapes: padded grid + bf16 MXU path ----
    Bt, Kt, Nt = 192, 512, 384
    kx2, kw2, kb2 = jax.random.split(jax.random.PRNGKey(1), 3)
    x2 = jax.random.normal(kx2, (Bt, Kt), dtype=jnp.float32)
    w2 = jax.random.normal(kw2, (Nt, Kt), dtype=jnp.float32) * 0.02
    b2 = jax.random.normal(kb2, (Nt,), dtype=jnp.float32)

    y2 = dason_net1_forward(x2, w2, b2, mxu_dtype=jnp.bfloat16)
    jax.block_until_ready(y2)

    # Reference with the same bf16 operand rounding, f32 accumulation.
    y2_ref = (x2.astype(jnp.bfloat16).astype(jnp.float32)
              @ w2.astype(jnp.bfloat16).astype(jnp.float32).T + b2)
    assert y2.shape == (Bt, Nt)
    assert jnp.allclose(y2, y2_ref, atol=1e-2, rtol=1e-2)

    print("KERNEL_OK")
</pallas_src>

<mosaic_0001>
module attributes {stable_mosaic.version = 11 : i64} {
  func.func @_linear_f32out_kernel(%arg0: i32, %arg1: i32, %arg2: i32, %arg3: memref<8x128xf32, #tpu.memory_space<vmem>>, %arg4: memref<128x128xf32, #tpu.memory_space<vmem>>, %arg5: memref<1x128xf32, #tpu.memory_space<vmem>>, %arg6: memref<8x128xf32, #tpu.memory_space<vmem>>) attributes {dimension_semantics = [#tpu.dimension_semantics<parallel>, #tpu.dimension_semantics<parallel>, #tpu.dimension_semantics<arbitrary>], iteration_bounds = array<i64: 1, 1, 1>, scalar_prefetch = 0 : i64, scratch_operands = 0 : i64, tpu.core_type = #tpu.core_type<tc>, window_params = [{transform_indices = @transform_0, window_bounds = array<i64: 8, 128>}, {transform_indices = @transform_1, window_bounds = array<i64: 128, 128>}, {transform_indices = @transform_2, window_bounds = array<i64: 1, 128>}, {transform_indices = @transform_3, window_bounds = array<i64: 8, 128>}]} {
    %c0_i32 = arith.constant 0 : i32
    %0 = arith.cmpi eq, %arg2, %c0_i32 : i32
    %1 = arith.extui %0 : i1 to i32
    %c0_i32_0 = arith.constant 0 : i32
    %2 = arith.cmpi ne, %1, %c0_i32_0 : i32
    scf.if %2 {
      %cst_10 = arith.constant 0.000000e+00 : f32
      %12 = vector.broadcast %cst_10 : f32 to vector<8x128xf32>
      %c0_11 = arith.constant 0 : index
      %c0_12 = arith.constant 0 : index
      %13 = vector.load %arg6[%c0_11, %c0_12] : memref<8x128xf32, #tpu.memory_space<vmem>>, vector<8x128xf32>
      tpu.vector_store %arg6[%c0_11, %c0_12], %12 {strides = array<i32>} : memref<8x128xf32, #tpu.memory_space<vmem>>, vector<8x128xf32>,
    } else {
    }
    %c0 = arith.constant 0 : index
    %c0_1 = arith.constant 0 : index
    %3 = vector.load %arg6[%c0, %c0_1] : memref<8x128xf32, #tpu.memory_space<vmem>>, vector<8x128xf32>
    %c0_2 = arith.constant 0 : index
    %c0_3 = arith.constant 0 : index
    %4 = vector.load %arg3[%c0_2, %c0_3] : memref<8x128xf32, #tpu.memory_space<vmem>>, vector<8x128xf32>
    %c0_4 = arith.constant 0 : index
    %c0_5 = arith.constant 0 : index
    %5 = vector.load %arg4[%c0_4, %c0_5] : memref<128x128xf32, #tpu.memory_space<vmem>>, vector<128x128xf32>
    %cst = arith.constant dense<0.000000e+00> : vector<8x128xf32>
    %6 = tpu.matmul %4, %5, %cst {dimension_numbers = #tpu.dot_dimension_numbers<[1], [1], [0], [0], [0, 0, 1, 0], [], []>} : vector<8x128xf32>, vector<128x128xf32>, vector<8x128xf32> -> vector<8x128xf32>
    %7 = arith.addf %3, %6 : vector<8x128xf32>
    %c0_6 = arith.constant 0 : index
    %c0_7 = arith.constant 0 : index
    %8 = vector.load %arg6[%c0_6, %c0_7] : memref<8x128xf32, #tpu.memory_space<vmem>>, vector<8x128xf32>
    tpu.vector_store %arg6[%c0_6, %c0_7], %7 {strides = array<i32>} : memref<8x128xf32, #tpu.memory_space<vmem>>, vector<8x128xf32>,
    %c0_i32_8 = arith.constant 0 : i32
    %9 = arith.cmpi eq, %arg2, %c0_i32_8 : i32
    %10 = arith.extui %9 : i1 to i32
    %c0_i32_9 = arith.constant 0 : i32
    %11 = arith.cmpi ne, %10, %c0_i32_9 : i32
    scf.if %11 {
      %c0_10 = arith.constant 0 : index
      %c0_11 = arith.constant 0 : index
      %12 = vector.load %arg6[%c0_10, %c0_11] : memref<8x128xf32, #tpu.memory_space<vmem>>, vector<8x128xf32>
      %c0_12 = arith.constant 0 : index
      %c0_13 = arith.constant 0 : index
      %13 = vector.load %arg5[%c0_12, %c0_13] : memref<1x128xf32, #tpu.memory_space<vmem>>, vector<1x128xf32>
      %14 = vector.broadcast %13 : vector<1x128xf32> to vector<8x128xf32>
      %15 = arith.addf %12, %14 : vector<8x128xf32>
      %c0_14 = arith.constant 0 : index
      %c0_15 = arith.constant 0 : index
      %16 = vector.load %arg6[%c0_14, %c0_15] : memref<8x128xf32, #tpu.memory_space<vmem>>, vector<8x128xf32>
      tpu.vector_store %arg6[%c0_14, %c0_15], %15 {strides = array<i32>} : memref<8x128xf32, #tpu.memory_space<vmem>>, vector<8x128xf32>,
    } else {
    }
    return
  }
  func.func @transform_0(%arg0: i32, %arg1: i32, %arg2: i32) -> (i32, i32) {
    %c0_i32 = arith.constant 0 : i32
    return %arg0, %arg2 : i32, i32
  }
  func.func @transform_1(%arg0: i32, %arg1: i32, %arg2: i32) -> (i32, i32) {
    %c0_i32 = arith.constant 0 : i32
    return %arg1, %arg2 : i32, i32
  }
  func.func @transform_2(%arg0: i32, %arg1: i32, %arg2: i32) -> (i32, i32) {
    %c0_i32 = arith.constant 0 : i32
    %c0_i32_0 = arith.constant 0 : i32
    return %c0_i32, %arg1 : i32, i32
  }
  func.func @transform_3(%arg0: i32, %arg1: i32, %arg2: i32) -> (i32, i32) {
    %c0_i32 = arith.constant 0 : i32
    return %arg0, %arg1 : i32, i32
  }
}

</mosaic_0001>

<bundles_post_ra>
// kernel: tpu_custom_call.1
= control target key start
LH: loop header
LB: loop body
LE: loop exit
PB: predicated region body
PF: predicated region fallthrough
CT: control target
= control target key end

     0   :  { %8 = vsyncpa [#allocation3], 0  ;;  %s240_s0 = inlined_call_operand.hbm [shape: f32[8,128], index: 0, kind: input, shape index: {}]   ;;  %s241_s1 = inlined_call_operand.hbm [shape: f32[128,128], index: 1, kind: input, shape index: {}]   ;;  %s242_s2 = inlined_call_operand.vmem [shape: f32[1,128], index: 2, kind: input, shape index: {}]   ;;  %s243_s3 = inlined_call_operand.hbm [shape: f32[8,128], index: 3, kind: output, shape index: {}]  }
   0x1   :  { %9 = vsyncpa [#allocation6], 0 }
   0x2   :  { %10 = vsyncpa [#allocation4], 0  ;;  %s16_s14 = sshll.u32 %s240_s0, 4  ;;  %s203_s15 = smov [#allocation2]   ;;  %s17_s14 = int_to_ptr.hbm [resolvable:$true] %s16_s14 }
   0x3   :  { %s18_s16 = sshll.u32 %s203_s15, 4  ;;  %s26_s19 = sshll.u32 %s241_s1, 4  ;;  %s19_s16 = int_to_ptr.vmem [resolvable:$true] %s18_s16  ;;  %s27_s19 = int_to_ptr.hbm [resolvable:$true] %s26_s19 }
   0x4   :  { %21 = dma.hbm_to_vmem [thread:$0]  %s17_s14, 128, %s19_s16, [#allocation3]  }
   0x5   :  { %s204_s20 = smov [#allocation5]   ;;  %s205_s22 = smov 128  }
   0x6   :  { %s28_s21 = sshll.u32 %s204_s20, 4  ;;  %s206_s23 = smov 8   ;;  %s29_s21 = int_to_ptr.vmem [resolvable:$true] %s28_s21 }
   0x7   :  { %34 = dma.hbm_to_vmem [thread:$0]  %s27_s19, 2048, %s29_s21, [#allocation6], %s205_s22, %s205_s22, %s206_s23  }
   0x8   :  { %197 = dma.done.wait [#allocation3], 128  }
   0x9   :  { %198 = vsyncadd [#allocation3], 4294967168 }
   0xa   :  { %199 = dma.done.wait [#allocation6], 2048  }
   0xb   :  { %200 = vsyncadd [#allocation6], 4294965248  ;;  %v67_v0 = vld [vmem:[#allocation5 + $0x78] sm:$0xff]  ;;  %v66_v1 = vld [vmem:[#allocation5 + $0x70] sm:$0xff]  ;;  %s207_s24 = smov [#allocation7]   ;;  %s107_s28 = sshll.u32 %s243_s3, 4  ;;  %s108_s28 = int_to_ptr.hbm [resolvable:$true] %s107_s28 }
   0xc   :  { %68 = vmatpush.xpose.msra.mxu0 %v67_v0  ;;  %v65_v2 = vld [vmem:[#allocation5 + $0x68] sm:$0xff]  ;;  %v64_v3 = vld [vmem:[#allocation5 + $0x60] sm:$0xff]  ;;  %v63_v4 = vld [vmem:[#allocation5 + $0x58] sm:$0xff]  ;;  %s105_s25 = sshll.u32 %s207_s24, 4  ;;  %s106_s25 = int_to_ptr.vmem [resolvable:$true] %s105_s25 }
   0xd   :  { %v62_v5 = vld [vmem:[#allocation5 + $0x50] sm:$0xff]  ;;  %v61_v6 = vld [vmem:[#allocation5 + $0x48] sm:$0xff]  ;;  %v60_v7 = vld [vmem:[#allocation5 + $0x40] sm:$0xff] }
   0xe   :  { %v59_v8 = vld [vmem:[#allocation5 + $0x38] sm:$0xff]  ;;  %v58_v9 = vld [vmem:[#allocation5 + $0x30] sm:$0xff]  ;;  %v57_v10 = vld [vmem:[#allocation5 + $0x28] sm:$0xff] }
   0xf   :  { %v56_v11 = vld [vmem:[#allocation5 + $0x20] sm:$0xff]  ;;  %v55_v12 = vld [vmem:[#allocation5 + $0x18] sm:$0xff]  ;;  %v54_v13 = vld [vmem:[#allocation5 + $0x10] sm:$0xff] }
  0x10   :  { %69 = vmatpush.xpose.msra.mxu0 %v66_v1  ;;  %v53_v14 = vld [vmem:[#allocation5 + $0x8] sm:$0xff]  ;;  %v52_v15 = vld [vmem:[#allocation5] sm:$0xff]  ;;  %v51_v16 = vld [vmem:[#allocation2] sm:$0xff] }
  0x11   :  { %v124_v17 = vld [vmem:[%s242_s2] ss:$0 sm:$0xff] }
  0x14   :  { %70 = vmatpush.xpose.msra.mxu0 %v65_v2 }
  0x18   :  { %71 = vmatpush.xpose.msra.mxu0 %v64_v3 }
  0x1c   :  { %72 = vmatpush.xpose.msra.mxu0 %v63_v4 }
  0x20   :  { %73 = vmatpush.xpose.msra.mxu0 %v62_v5 }
  0x24   :  { %74 = vmatpush.xpose.msra.mxu0 %v61_v6 }
  0x28   :  { %75 = vmatpush.xpose.msra.mxu0 %v60_v7 }
  0x2c   :  { %76 = vmatpush.xpose.msra.mxu0 %v59_v8 }
  0x30   :  { %77 = vmatpush.xpose.msra.mxu0 %v58_v9 }
  0x34   :  { %78 = vmatpush.xpose.msra.mxu0 %v57_v10 }
  0x38   :  { %79 = vmatpush.xpose.msra.mxu0 %v56_v11 }
  0x3c   :  { %80 = vmatpush.xpose.msra.mxu0 %v55_v12 }
  0x40   :  { %81 = vmatpush.xpose.msra.mxu0 %v54_v13 }
  0x44   :  { %82 = vmatpush.xpose.msra.mxu0 %v53_v14 }
  0x48   :  { %83 = vmatpush.xpose.msra.mxu0 %v52_v15 }
  0x4b   :  { %84 = vmatmul.f32.vlgmr.msra.gmra.mxu0 %v51_v16 }
  0xc8   :  { %v85_v18 = vpop.f32.mrf.mxu0 }
  0xc9   :  { %v98_v19 = vadd.f32 %v124_v17, %v85_v18 }
  0xcb   :  { %99 = vst [vmem:[#allocation7] sm:$0xff] %v98_v19 }
  0xcc   :  { %110 = dma.vmem_to_hbm [thread:$0]  %s106_s25, 128, %s108_s28, [#allocation4]  }
  0xcd   :  { %201 = dma.done.wait [#allocation4], 128  }
  0xce   :  { %202 = vsyncadd [#allocation4], 4294967168 }
  0xcf   :  { %115 = vsyncpa [#allocation3], 1 }
  0xd0   :  { %116 = vsyncpa [#allocation6], 1 }
  0xd1   :  { %117 = vsyncpa [#allocation4], 1 }

</bundles_post_ra>
